<compile_context>
chip_gen: v5e
topology: v5e:2x2
jax: 0.10.0
libtpu: 0.0.40
codegen_flags: <defaults>
</compile_context>

<pallas_src>
import jax
import jax.numpy as jnp
from jax.experimental import pallas as pl
from jax.experimental.pallas import tpu as pltpu


FEAT_DIM = 2048      # in_features of the classifier head
N_CLASSES = 3        # out_features of the classifier head
OUT_PAD = 128        # lane-dense padded output width


def _round_up(x, m):
    return ((x + m - 1) // m) * m


def _vmem_plan():
    """Returns (per-buffer x-tile byte cap, vmem_limit_bytes) per chip gen."""
    try:
        cap = int(pltpu.get_tpu_info().vmem_capacity_bytes)
    except Exception:
        cap = 64 * 1024 * 1024  # unknown: assume the smallest (v7x-like) VMEM
    if cap >= 100 * 1024 * 1024:                      # v5e / v6e: 128 MiB VMEM
        return 16 * 1024 * 1024, 80 * 1024 * 1024
    return 8 * 1024 * 1024, 32 * 1024 * 1024          # v7x / unknown: 64 MiB VMEM


def _resident_spec(shape):
    """Constant-index (grid-invariant) operand; single-buffered if supported."""
    idx = lambda i, j: (0,) * len(shape)
    try:
        return pl.BlockSpec(shape, idx, pipeline_mode=pl.Buffered(1))
    except Exception:  # older JAX without pipeline_mode / Buffered
        return pl.BlockSpec(shape, idx)


def _make_kernel(inv_hw):
    def kernel(x_ref, wb_ref, bb_ref, wc_ref, bc_ref, out_ref, pooled_acc):
        # x_ref:      (tb, C, thw) f32   batch tile, spatial (HW) on lanes
        # wb_ref:     (C, 2048)    f32   backbone 1x1-conv-equivalent weight
        # bb_ref:     (1, 2048)    f32   backbone projection bias
        # wc_ref:     (2048, 128)  f32   classifier weight, zero-padded past col 3
        # bc_ref:     (1, 128)     f32   classifier bias, zero-padded past col 3
        # out_ref:    (tb, 128)    f32   lane-dense logits tile (resident over HW axis)
        # pooled_acc: (tb, C)      f32   spatial-sum accumulator (VMEM scratch)
        hw_step = pl.program_id(1)

        @pl.when(hw_step == 0)
        def _init():
            pooled_acc[...] = jnp.zeros_like(pooled_acc)

        # Global average pool (sum part): lane-axis reduce, f32 accumulation.
        # HW zero-padding contributes zeros to the sum, so it is harmless.
        pooled_acc[...] += jnp.sum(x_ref[...], axis=-1, dtype=jnp.float32)

        @pl.when(hw_step == pl.num_programs(1) - 1)
        def _finalize():
            pooled = pooled_acc[...] * inv_hw                     # mean (true HW)
            # Backbone stand-in: project C -> 2048 features + ReLU.
            feats = jnp.dot(pooled, wb_ref[...],
                            preferred_element_type=jnp.float32) + bb_ref[...]
            feats = jnp.maximum(feats, 0.0)
            # flatten(x, 1): already (tb, 2048). Dropout(p=0.2): identity (eval).
            out_ref[...] = jnp.dot(feats, wc_ref[...],
                                   preferred_element_type=jnp.float32) + bc_ref[...]
    return kernel


def multilabel_classifier2_forward(x_nchw, prepared, *, batch_tile=None, hw_tile=None):
    """Forward pass. x_nchw: (B, C, H, W). Returns {'label': (B, 3)} in f32."""
    B, C, H, W = x_nchw.shape
    HW = H * W
    x = x_nchw.reshape(B, C, HW)          # contiguous reshape: no HBM copy

    x_cap_bytes, vmem_limit = _vmem_plan()
    itemsize = jnp.dtype(x.dtype).itemsize

    # Batch tile: multiple of 8 sublanes; shrink if even a 128-lane HW tile
    # would overflow the per-buffer cap (large C).
    if batch_tile is None:
        tb = min(128, _round_up(B, 8))
        while tb > 8 and tb * C * 128 * itemsize > x_cap_bytes:
            tb -= 8
    else:
        tb = max(8, _round_up(batch_tile, 8))

    # HW tile (lane dim): multiple of 128, as big as the per-buffer cap allows.
    if hw_tile is None:
        max_thw = max(128, (x_cap_bytes // (tb * C * itemsize)) // 128 * 128)
        thw = min(_round_up(HW, 128), max_thw)
    else:
        thw = max(128, _round_up(hw_tile, 128))

    b_pad = _round_up(B, tb)
    hw_pad = _round_up(HW, thw)
    if b_pad != B or hw_pad != HW:
        x = jnp.pad(x, ((0, b_pad - B), (0, 0), (0, hw_pad - HW)))

    grid = (b_pad // tb, hw_pad // thw)   # (parallel batch, reduction over HW)

    kernel = _make_kernel(1.0 / float(HW))

    in_specs = [
        pl.BlockSpec((tb, C, thw), lambda i, j: (i, 0, j)),   # x: streamed
        _resident_spec((C, FEAT_DIM)),                        # wb
        _resident_spec((1, FEAT_DIM)),                        # bb
        _resident_spec((FEAT_DIM, OUT_PAD)),                  # wc
        _resident_spec((1, OUT_PAD)),                         # bc
    ]

    cost = pl.CostEstimate(
        flops=int(b_pad * C * hw_pad
                  + 2 * b_pad * (C * FEAT_DIM + FEAT_DIM * OUT_PAD)),
        transcendentals=0,
        bytes_accessed=int(b_pad * C * hw_pad * itemsize
                           + (C * FEAT_DIM + FEAT_DIM * OUT_PAD + 2 * FEAT_DIM) * 4
                           + b_pad * OUT_PAD * 4),
    )

    logits_pad = pl.pallas_call(
        kernel,
        out_shape=jax.ShapeDtypeStruct((b_pad, OUT_PAD), jnp.float32),
        grid=grid,
        in_specs=in_specs,
        out_specs=pl.BlockSpec((tb, OUT_PAD), lambda i, j: (i, 0)),
        scratch_shapes=[pltpu.VMEM((tb, C), jnp.float32)],
        compiler_params=pltpu.CompilerParams(
            dimension_semantics=("parallel", "arbitrary"),
            vmem_limit_bytes=vmem_limit,
        ),
        cost_estimate=cost,
    )(x, prepared["wb"], prepared["bb"], prepared["wc"], prepared["bc"])

    # Drop batch padding and the lane padding of the classifier output.
    return {"label": logits_pad[:B, :N_CLASSES]}


def init_params(key, in_channels, feat_dim=FEAT_DIM, n_classes=N_CLASSES):
    k1, k2, k3, k4 = jax.random.split(key, 4)
    # Deterministic synthetic weights (no checkpoint available in-script).
    w_backbone = jax.random.normal(k1, (in_channels, feat_dim), jnp.float32) * 0.05
    b_backbone = jax.random.normal(k2, (1, feat_dim), jnp.float32) * 0.01
    # PyTorch nn.Linear(2048, 3) stores weight as (3, 2048); kept transposed here.
    w_cls = jax.random.normal(k3, (feat_dim, n_classes), jnp.float32) * 0.02
    b_cls = jax.random.normal(k4, (1, n_classes), jnp.float32) * 0.01
    return {"w_backbone": w_backbone, "b_backbone": b_backbone,
            "w_cls": w_cls, "b_cls": b_cls}


def prepare_params(raw):
    """One-time weight prep (done outside the per-call path)."""
    wb = raw["w_backbone"].astype(jnp.float32)                           # (C, 2048)
    bb = raw["b_backbone"].reshape(1, FEAT_DIM).astype(jnp.float32)      # (1, 2048)
    wc = jnp.zeros((FEAT_DIM, OUT_PAD), jnp.float32)
    wc = wc.at[:, :N_CLASSES].set(raw["w_cls"].astype(jnp.float32))      # (2048, 128)
    bc = jnp.zeros((1, OUT_PAD), jnp.float32)
    bc = bc.at[:, :N_CLASSES].set(raw["b_cls"].reshape(1, N_CLASSES)
                                  .astype(jnp.float32))                  # (1, 128)
    return {"wb": wb, "bb": bb, "wc": wc, "bc": bc}


def _reference_forward(x_nchw, raw):
    """Pure-JAX reference of the same forward pass (for correctness check)."""
    B, C, H, W = x_nchw.shape
    pooled = jnp.mean(x_nchw.reshape(B, C, H * W), axis=-1)              # (B, C)
    feats = jnp.maximum(pooled @ raw["w_backbone"] + raw["b_backbone"], 0.0)
    return feats @ raw["w_cls"] + raw["b_cls"]


if __name__ == "__main__":
    key = jax.random.PRNGKey(0)
    kx, kp = jax.random.split(key)

    B, C, H, W = 2, 4, 16, 16
    x = jax.random.normal(kx, (B, C, H, W), jnp.float32)     # NCHW, like PyTorch
    raw_params = init_params(kp, in_channels=C)
    params = prepare_params(raw_params)

    out = multilabel_classifier2_forward(x, params)
    jax.block_until_ready(out["label"])
    assert out["label"].shape == (B, N_CLASSES)

    ref = _reference_forward(x, raw_params)
    assert jnp.allclose(out["label"], ref, rtol=5e-2, atol=5e-3), (
        float(jnp.max(jnp.abs(out["label"] - ref))))

    print("KERNEL_OK")
</pallas_src>

<mosaic_0001>
module attributes {stable_mosaic.version = 11 : i64} {
  func.func @kernel(%arg0: i32, %arg1: i32, %arg2: memref<8x4x256xf32, #tpu.memory_space<vmem>>, %arg3: memref<4x2048xf32, #tpu.memory_space<vmem>>, %arg4: memref<1x2048xf32, #tpu.memory_space<vmem>>, %arg5: memref<2048x128xf32, #tpu.memory_space<vmem>>, %arg6: memref<1x128xf32, #tpu.memory_space<vmem>>, %arg7: memref<8x128xf32, #tpu.memory_space<vmem>>, %arg8: memref<8x4xf32, #tpu.memory_space<vmem>>) attributes {dimension_semantics = [#tpu.dimension_semantics<parallel>, #tpu.dimension_semantics<arbitrary>], iteration_bounds = array<i64: 1, 1>, scalar_prefetch = 0 : i64, scratch_operands = 1 : i64, tpu.core_type = #tpu.core_type<tc>, window_params = [{transform_indices = @transform_0, window_bounds = array<i64: 8, 4, 256>}, {pipeline_mode = #tpu.pipeline_mode<synchronous>, transform_indices = @transform_1, window_bounds = array<i64: 4, 2048>}, {pipeline_mode = #tpu.pipeline_mode<synchronous>, transform_indices = @transform_2, window_bounds = array<i64: 1, 2048>}, {pipeline_mode = #tpu.pipeline_mode<synchronous>, transform_indices = @transform_3, window_bounds = array<i64: 2048, 128>}, {pipeline_mode = #tpu.pipeline_mode<synchronous>, transform_indices = @transform_4, window_bounds = array<i64: 1, 128>}, {transform_indices = @transform_5, window_bounds = array<i64: 8, 128>}]} {
    %c0_i32 = arith.constant 0 : i32
    %0 = arith.cmpi eq, %arg1, %c0_i32 : i32
    %1 = arith.extui %0 : i1 to i32
    %c0_i32_0 = arith.constant 0 : i32
    %2 = arith.cmpi ne, %1, %c0_i32_0 : i32
    scf.if %2 {
      %cst_9 = arith.constant 0.000000e+00 : f32
      %11 = vector.broadcast %cst_9 : f32 to vector<8x4xf32>
      %c0_10 = arith.constant 0 : index
      %c0_11 = arith.constant 0 : index
      %12 = vector.load %arg8[%c0_10, %c0_11] : memref<8x4xf32, #tpu.memory_space<vmem>>, vector<8x4xf32>
      tpu.vector_store %arg8[%c0_10, %c0_11], %11 {strides = array<i32>} : memref<8x4xf32, #tpu.memory_space<vmem>>, vector<8x4xf32>,
    } else {
    }
    %c0 = arith.constant 0 : index
    %c0_1 = arith.constant 0 : index
    %3 = vector.load %arg8[%c0, %c0_1] : memref<8x4xf32, #tpu.memory_space<vmem>>, vector<8x4xf32>
    %c0_2 = arith.constant 0 : index
    %c0_3 = arith.constant 0 : index
    %c0_4 = arith.constant 0 : index
    %4 = vector.load %arg2[%c0_2, %c0_3, %c0_4] : memref<8x4x256xf32, #tpu.memory_space<vmem>>, vector<8x4x256xf32>
    %cst = arith.constant dense<0.000000e+00> : vector<8x4xf32>
    %5 = vector.multi_reduction <add>, %4, %cst [2] : vector<8x4x256xf32> to vector<8x4xf32>
    %6 = arith.addf %3, %5 : vector<8x4xf32>
    %c0_5 = arith.constant 0 : index
    %c0_6 = arith.constant 0 : index
    %7 = vector.load %arg8[%c0_5, %c0_6] : memref<8x4xf32, #tpu.memory_space<vmem>>, vector<8x4xf32>
    tpu.vector_store %arg8[%c0_5, %c0_6], %6 {strides = array<i32>} : memref<8x4xf32, #tpu.memory_space<vmem>>, vector<8x4xf32>,
    %c0_i32_7 = arith.constant 0 : i32
    %8 = arith.cmpi eq, %arg1, %c0_i32_7 : i32
    %9 = arith.extui %8 : i1 to i32
    %c0_i32_8 = arith.constant 0 : i32
    %10 = arith.cmpi ne, %9, %c0_i32_8 : i32
    scf.if %10 {
      %c0_9 = arith.constant 0 : index
      %c0_10 = arith.constant 0 : index
      %11 = vector.load %arg8[%c0_9, %c0_10] : memref<8x4xf32, #tpu.memory_space<vmem>>, vector<8x4xf32>
      %cst_11 = arith.constant 3.906250e-03 : f32
      %12 = vector.broadcast %cst_11 : f32 to vector<8x4xf32>
      %13 = arith.mulf %11, %12 : vector<8x4xf32>
      %c0_12 = arith.constant 0 : index
      %c0_13 = arith.constant 0 : index
      %14 = vector.load %arg3[%c0_12, %c0_13] : memref<4x2048xf32, #tpu.memory_space<vmem>>, vector<4x2048xf32>
      %cst_14 = arith.constant dense<0.000000e+00> : vector<8x2048xf32>
      %15 = tpu.matmul %13, %14, %cst_14 {dimension_numbers = #tpu.dot_dimension_numbers<[1], [0], [0], [1], [0, 0, 1, 1], [], []>} : vector<8x4xf32>, vector<4x2048xf32>, vector<8x2048xf32> -> vector<8x2048xf32>
      %c0_15 = arith.constant 0 : index
      %c0_16 = arith.constant 0 : index
      %16 = vector.load %arg4[%c0_15, %c0_16] : memref<1x2048xf32, #tpu.memory_space<vmem>>, vector<1x2048xf32>
      %17 = vector.broadcast %16 : vector<1x2048xf32> to vector<8x2048xf32>
      %18 = arith.addf %15, %17 : vector<8x2048xf32>
      %cst_17 = arith.constant 0.000000e+00 : f32
      %19 = vector.broadcast %cst_17 : f32 to vector<8x2048xf32>
      %20 = arith.maximumf %18, %19 : vector<8x2048xf32>
      %c0_18 = arith.constant 0 : index
      %c0_19 = arith.constant 0 : index
      %21 = vector.load %arg5[%c0_18, %c0_19] : memref<2048x128xf32, #tpu.memory_space<vmem>>, vector<2048x128xf32>
      %cst_20 = arith.constant dense<0.000000e+00> : vector<8x128xf32>
      %22 = tpu.matmul %20, %21, %cst_20 {dimension_numbers = #tpu.dot_dimension_numbers<[1], [0], [0], [1], [0, 0, 1, 1], [], []>} : vector<8x2048xf32>, vector<2048x128xf32>, vector<8x128xf32> -> vector<8x128xf32>
      %c0_21 = arith.constant 0 : index
      %c0_22 = arith.constant 0 : index
      %23 = vector.load %arg6[%c0_21, %c0_22] : memref<1x128xf32, #tpu.memory_space<vmem>>, vector<1x128xf32>
      %24 = vector.broadcast %23 : vector<1x128xf32> to vector<8x128xf32>
      %25 = arith.addf %22, %24 : vector<8x128xf32>
      %c0_23 = arith.constant 0 : index
      %c0_24 = arith.constant 0 : index
      %26 = vector.load %arg7[%c0_23, %c0_24] : memref<8x128xf32, #tpu.memory_space<vmem>>, vector<8x128xf32>
      tpu.vector_store %arg7[%c0_23, %c0_24], %25 {strides = array<i32>} : memref<8x128xf32, #tpu.memory_space<vmem>>, vector<8x128xf32>,
    } else {
    }
    return
  }
  func.func @transform_0(%arg0: i32, %arg1: i32) -> (i32, i32, i32) {
    %c0_i32 = arith.constant 0 : i32
    %c0_i32_0 = arith.constant 0 : i32
    return %arg0, %c0_i32, %arg1 : i32, i32, i32
  }
  func.func @transform_1(%arg0: i32, %arg1: i32) -> (i32, i32) {
    %c0_i32 = arith.constant 0 : i32
    %c0_i32_0 = arith.constant 0 : i32
    %c0_i32_1 = arith.constant 0 : i32
    return %c0_i32, %c0_i32_0 : i32, i32
  }
  func.func @transform_2(%arg0: i32, %arg1: i32) -> (i32, i32) {
    %c0_i32 = arith.constant 0 : i32
    %c0_i32_0 = arith.constant 0 : i32
    %c0_i32_1 = arith.constant 0 : i32
    return %c0_i32, %c0_i32_0 : i32, i32
  }
  func.func @transform_3(%arg0: i32, %arg1: i32) -> (i32, i32) {
    %c0_i32 = arith.constant 0 : i32
    %c0_i32_0 = arith.constant 0 : i32
    %c0_i32_1 = arith.constant 0 : i32
    return %c0_i32, %c0_i32_0 : i32, i32
  }
  func.func @transform_4(%arg0: i32, %arg1: i32) -> (i32, i32) {
    %c0_i32 = arith.constant 0 : i32
    %c0_i32_0 = arith.constant 0 : i32
    %c0_i32_1 = arith.constant 0 : i32
    return %c0_i32, %c0_i32_0 : i32, i32
  }
  func.func @transform_5(%arg0: i32, %arg1: i32) -> (i32, i32) {
    %c0_i32 = arith.constant 0 : i32
    %c0_i32_0 = arith.constant 0 : i32
    return %arg0, %c0_i32 : i32, i32
  }
}

</mosaic_0001>

<bundles_post_ra>
// kernel: tpu_custom_call.1
= control target key start
LH: loop header
LB: loop body
LE: loop exit
PB: predicated region body
PF: predicated region fallthrough
CT: control target
= control target key end

     0   :  { %10 = vsyncpa [#allocation4], 0  ;;  %s1573_s0 = inlined_call_operand.hbm [shape: f32[8,4,256], index: 0, kind: input, shape index: {}]   ;;  %s1574_s1 = inlined_call_operand.hbm [shape: f32[4,2048], index: 1, kind: input, shape index: {}]   ;;  %s1575_s2 = inlined_call_operand.hbm [shape: f32[1,2048], index: 2, kind: input, shape index: {}]   ;;  %s1576_s3 = inlined_call_operand.hbm [shape: f32[2048,128], index: 3, kind: input, shape index: {}]   ;;  %s1577_s4 = inlined_call_operand.vmem [shape: f32[1,128], index: 4, kind: input, shape index: {}]   ;;  %s1578_s5 = inlined_call_operand.hbm [shape: f32[8,128], index: 5, kind: output, shape index: {}]  }
   0x1   :  { %11 = vsyncpa [#allocation7], 0 }
   0x2   :  { %12 = vsyncpa [#allocation10], 0  ;;  %s32_s20 = sshll.u32 %s1574_s1, 4  ;;  %s33_s20 = int_to_ptr.hbm [resolvable:$true] %s32_s20 }
   0x3   :  { %13 = vsyncpa [#allocation5], 0  ;;  %s1447_s21 = smov [#allocation6]   ;;  %s18_s25 = sshll.u32 %s1573_s0, 4  ;;  %s19_s25 = int_to_ptr.hbm [resolvable:$true] %s18_s25 }
   0x4   :  { %s34_s22 = sshll.u32 %s1447_s21, 4  ;;  %s1448_s26 = smov [#allocation3]   ;;  %s35_s22 = int_to_ptr.vmem [resolvable:$true] %s34_s22 }
   0x5   :  { %37 = dma.hbm_to_vmem [thread:$0]  %s33_s20, 1024, %s35_s22, [#allocation7]  }
   0x6   :  { %s20_s27 = sshll.u32 %s1448_s26, 4  ;;  %s1449_s28 = smov 128   ;;  %s21_s27 = int_to_ptr.vmem [resolvable:$true] %s20_s27 }
   0x7   :  { %s1450_s29 = smov 8   ;;  %s43_s1 = sshll.u32 %s1575_s2, 4  ;;  %s44_s1 = int_to_ptr.hbm [resolvable:$true] %s43_s1 }
   0x8   :  { %26 = dma.hbm_to_vmem [thread:$0]  %s19_s25, 1024, %s21_s27, [#allocation4], %s1449_s28, %s1449_s28, %s1450_s29  }
   0x9   :  { %s1451_s7 = smov [#allocation8]   ;;  %s53_s0 = sshll.u32 %s1576_s3, 4  ;;  %s54_s0 = int_to_ptr.hbm [resolvable:$true] %s53_s0 }
   0xa   :  { %s45_s8 = sshll.u32 %s1451_s7, 4  ;;  %s1452_s11 = smov [#allocation9]   ;;  %s46_s8 = int_to_ptr.vmem [resolvable:$true] %s45_s8 }
   0xb   :  { %48 = dma.hbm_to_vmem [thread:$0]  %s44_s1, 256, %s46_s8, [#allocation7]  }
   0xc   :  { %s55_s12 = sshll.u32 %s1452_s11, 4  ;;  %s56_s12 = int_to_ptr.vmem [resolvable:$true] %s55_s12 }
   0xd   :  { %61 = dma.hbm_to_vmem [thread:$0]  %s54_s0, 32768, %s56_s12, [#allocation10], %s1449_s28, %s1449_s28, %s1450_s29  }
   0xe   :  { %1439 = dma.done.wait [#allocation4], 1024  }
   0xf   :  { %1440 = vsyncadd [#allocation4], 4294966272 }
  0x10   :  { %1441 = dma.done.wait [#allocation7], 1280  }
  0x11   :  { %1442 = vsyncadd [#allocation7], 4294966016 }
  0x12   :  { %1443 = dma.done.wait [#allocation10], 32768  }
  0x13   :  { %1444 = vsyncadd [#allocation10], 4294934528  ;;  %v87_v0 = vld [vmem:[#allocation3] sm:$0xff]  ;;  %v89_v1 = vld [vmem:[#allocation3 + $0x10] sm:$0xff]  ;;  %vm146_vm0 = vcmask 1043456   ;;  %vm84_vm1 = vcmask 31744   ;;  %v195_v53 = vlaneseq }
  0x14   :  { %103 = vst [vmem:[#allocation1] ss:$2 sm:$0xff] %v87_v0  ;;  %v88_v2 = vld [vmem:[#allocation3 + $0x8] sm:$0xff]  ;;  %v90_v3 = vld [vmem:[#allocation3 + $0x18] sm:$0xff]  ;;  %v91_v4 = vld [vmem:[#allocation3 + $0x20] sm:$0xff]  ;;  %v1453_v52 = vmov 0.0  }
  0x15   :  { %111 = vst [vmem:[#allocation1 + $0x20] ss:$2 sm:$0xff] %v89_v1  ;;  %v93_v5 = vld [vmem:[#allocation3 + $0x30] sm:$0xff]  ;;  %v92_v10 = vld [vmem:[#allocation3 + $0x28] sm:$0xff]  ;;  %v94_v16 = vld [vmem:[#allocation3 + $0x38] sm:$0xff]  ;;  %v196_v60 = vand.u32 127, %v195_v53 }
  0x16   :  { %107 = vst [vmem:[#allocation1 + $0x10] ss:$2 sm:$0xff] %v88_v2  ;;  %v228_v22 = vld [vmem:[#allocation6] sm:$0xff]  ;;  %v230_v27 = vld [vmem:[#allocation6 + $0x10] sm:$0xff]  ;;  %v229_v33 = vld [vmem:[#allocation6 + $0x8] sm:$0xff]  ;;  %vm205_vm2 = vcmask 1041409  }
  0x17   :  { %115 = vst [vmem:[#allocation1 + $0x30] ss:$2 sm:$0xff] %v90_v3  ;;  %v231_v38 = vld [vmem:[#allocation6 + $0x18] sm:$0xff]  ;;  %v232_v56 = vld [vmem:[#allocation6 + $0x20] sm:$0xff]  ;;  %v233_v57 = vld [vmem:[#allocation6 + $0x28] sm:$0xff]  ;;  %vm207_vm3 = vcmask 1042434  }
  0x18   :  { %85 = vst.msk [vmem:[#allocation2] sm:$0xff] %vm84_vm1, %v1453_v52  ;;  %v234_v0 = vld [vmem:[#allocation6 + $0x30] sm:$0xff]  ;;  %v235_v3 = vld [vmem:[#allocation6 + $0x38] sm:$0xff]  ;;  %vm209_vm4 = vcmask 1043459   ;;  %vm211_vm5 = vcmask 1044484   ;;  %vm213_vm6 = vcmask 1045509  }
  0x19   :  { %vm215_vm7 = vcmask 1046534   ;;  %vm217_vm8 = vcmask 1047559   ;;  %v722_v52 = vld [vmem:[#allocation9 + $0x160] sm:$0xff]  ;;  %s1266_s16 = sshll.u32 %s1578_s5, 4  ;;  %s1267_s16 = int_to_ptr.hbm [resolvable:$true] %s1266_s16 }
  0x1a   :  { %v738_v53 = vld [vmem:[#allocation9 + $0x1e0] sm:$0xff] }
  0x1b   :  { %v104_v6 = vld.sshfl [vmem:[#allocation1] sm:$0xff pattern:$0x75316420]  ;;  %v105_v7 = vld.sshfl [vmem:[#allocation1 + $0x8] sm:$0xff pattern:$0x75316420] }
  0x1c   :  { %v147_v8 = vsel %vm146_vm0, %v104_v6, 0.0  ;;  %v148_v9 = vsel %vm146_vm0, %v105_v7, 0.0  ;;  %118 = vst [vmem:[#allocation1] ss:$2 sm:$0xff] %v91_v4 }
  0x1d   :  { %v149_v11 = vadd.f32 %v148_v9, %v147_v8  ;;  %v112_v12 = vld.sshfl [vmem:[#allocation1 + $0x20] sm:$0xff pattern:$0x75316420]  ;;  %v113_v13 = vld.sshfl [vmem:[#allocation1 + $0x28] sm:$0xff pattern:$0x75316420] }
  0x1e   :  { %v157_v14 = vsel %vm146_vm0, %v112_v12, 0.0  ;;  %v158_v15 = vsel %vm146_vm0, %v113_v13, 0.0  ;;  %124 = vst [vmem:[#allocation1 + $0x20] ss:$2 sm:$0xff] %v93_v5 }
  0x1f   :  { %150 = vadd.xlane.f32.xlu0 %v149_v11  ;;  %v159_v17 = vadd.f32 %v158_v15, %v157_v14  ;;  %v108_v18 = vld.sshfl [vmem:[#allocation1 + $0x10] sm:$0xff pattern:$0x75316420]  ;;  %v109_v19 = vld.sshfl [vmem:[#allocation1 + $0x18] sm:$0xff pattern:$0x75316420] }
  0x20   :  { %121 = vst [vmem:[#allocation1 + $0x10] ss:$2 sm:$0xff] %v92_v10  ;;  %v152_v20 = vsel %vm146_vm0, %v108_v18, 0.0  ;;  %v153_v21 = vsel %vm146_vm0, %v109_v19, 0.0 }
  0x21   :  { %160 = vadd.xlane.f32.xlu1 %v159_v17  ;;  %v116_v23 = vld.sshfl [vmem:[#allocation1 + $0x30] sm:$0xff pattern:$0x75316420]  ;;  %v117_v24 = vld.sshfl [vmem:[#allocation1 + $0x38] sm:$0xff pattern:$0x75316420]  ;;  %v154_v28 = vadd.f32 %v153_v21, %v152_v20 }
  0x22   :  { %127 = vst [vmem:[#allocation1 + $0x30] ss:$2 sm:$0xff] %v94_v16  ;;  %v162_v25 = vsel %vm146_vm0, %v116_v23, 0.0  ;;  %v163_v26 = vsel %vm146_vm0, %v117_v24, 0.0  ;;  %v86_v23 = vld [vmem:[#allocation2] sm:$0xff] }
  0x23   :  { %v119_v29 = vld.sshfl [vmem:[#allocation1] sm:$0xff pattern:$0x75316420]  ;;  %v120_v30 = vld.sshfl [vmem:[#allocation1 + $0x8] sm:$0xff pattern:$0x75316420]  ;;  %v164_v35 = vadd.f32 %v163_v26, %v162_v25 }
  0x24   :  { %v167_v31 = vsel %vm146_vm0, %v119_v29, 0.0  ;;  %v168_v32 = vsel %vm146_vm0, %v120_v30, 0.0  ;;  %280 = vst [vmem:[#allocation1] ss:$2 sm:$0xff] %v228_v22 }
  0x25   :  { %v169_v34 = vadd.f32 %v168_v32, %v167_v31  ;;  %v125_v36 = vld.sshfl [vmem:[#allocation1 + $0x20] sm:$0xff pattern:$0x75316420]  ;;  %v126_v37 = vld.sshfl [vmem:[#allocation1 + $0x28] sm:$0xff pattern:$0x75316420] }
  0x26   :  { %284 = vst [vmem:[#allocation1 + $0x20] ss:$2 sm:$0xff] %v230_v27  ;;  %v177_v43 = vsel %vm146_vm0, %v125_v36, 0.0  ;;  %v178_v44 = vsel %vm146_vm0, %v126_v37, 0.0 }
  0x27   :  { %155 = vadd.xlane.f32.xlu0 %v154_v28  ;;  %170 = vadd.xlane.f32.xlu2 %v169_v34  ;;  %v122_v39 = vld.sshfl [vmem:[#allocation1 + $0x10] sm:$0xff pattern:$0x75316420]  ;;  %v123_v40 = vld.sshfl [vmem:[#allocation1 + $0x18] sm:$0xff pattern:$0x75316420]  ;;  %v179_v50 = vadd.f32 %v178_v44, %v177_v43 }
  0x28   :  { %v172_v41 = vsel %vm146_vm0, %v122_v39, 0.0  ;;  %v173_v42 = vsel %vm146_vm0, %v123_v40, 0.0  ;;  %282 = vst [vmem:[#allocation1 + $0x10] ss:$2 sm:$0xff] %v229_v33  ;;  %v709_v39 = vld [vmem:[#allocation9 + $0xf8] sm:$0xff]  ;;  %v708_v43 = vld [vmem:[#allocation9 + $0xf0] sm:$0xff] }
  0x29   :  { %165 = vadd.xlane.f32.xlu1 %v164_v35  ;;  %v128_v45 = vld.sshfl [vmem:[#allocation1 + $0x30] sm:$0xff pattern:$0x75316420]  ;;  %v129_v46 = vld.sshfl [vmem:[#allocation1 + $0x38] sm:$0xff pattern:$0x75316420]  ;;  %v174_v49 = vadd.f32 %v173_v42, %v172_v41 }
  0x2a   :  { %v182_v47 = vsel %vm146_vm0, %v128_v45, 0.0  ;;  %v183_v48 = vsel %vm146_vm0, %v129_v46, 0.0  ;;  %286 = vst [vmem:[#allocation1 + $0x30] ss:$2 sm:$0xff] %v231_v38  ;;  %v693_v38 = vld [vmem:[#allocation9 + $0x78] sm:$0xff]  ;;  %v692_v42 = vld [vmem:[#allocation9 + $0x70] sm:$0xff] }
  0x2b   :  { %v184_v51 = vadd.f32 %v183_v48, %v182_v47  ;;  %v287_v55 = vld.sshfl [vmem:[#allocation1] sm:$0xff pattern:$0x75316420]  ;;  %v288_v58 = vld.sshfl [vmem:[#allocation1 + $0x8] sm:$0xff pattern:$0x75316420] }
  0x2c   :  { %1278 = vmatpush.msk.msra.mxu0 %vm146_vm0, %v287_v55  ;;  %295 = vst [vmem:[#allocation1] ss:$2 sm:$0xff] %v232_v56  ;;  %1280 = vmatpush.msk.msra.mxu1 %vm146_vm0, %v288_v58  ;;  %v725_v40 = vld [vmem:[#allocation9 + $0x178] sm:$0xff]  ;;  %v724_v44 = vld [vmem:[#allocation9 + $0x170] sm:$0xff]  ;;  %v691_v46 = vld [vmem:[#allocation9 + $0x68] sm:$0xff] }
  0x2d   :  { %v291_v63 = vld.sshfl [vmem:[#allocation1 + $0x20] sm:$0xff pattern:$0x75316420]  ;;  %v292_v1 = vld.sshfl [vmem:[#allocation1 + $0x28] sm:$0xff pattern:$0x75316420] }
  0x2e   :  { %1286 = vmatpush.msk.msrb.mxu0 %vm146_vm0, %v291_v63  ;;  %297 = vst [vmem:[#allocation1 + $0x20] ss:$2 sm:$0xff] %v234_v0  ;;  %1288 = vmatpush.msk.msrb.mxu1 %vm146_vm0, %v292_v1  ;;  %v741_v41 = vld [vmem:[#allocation9 + $0x1f8] sm:$0xff]  ;;  %v740_v45 = vld [vmem:[#allocation9 + $0x1f0] sm:$0xff]  ;;  %v707_v47 = vld [vmem:[#allocation9 + $0xe8] sm:$0xff] }
  0x2f   :  { %175 = vadd.xlane.f32.xlu2 %v174_v49  ;;  %180 = vadd.xlane.f32.xlu0 %v179_v50  ;;  %v289_v59 = vld.sshfl [vmem:[#allocation1 + $0x10] sm:$0xff pattern:$0x75316420]  ;;  %v290_v62 = vld.sshfl [vmem:[#allocation1 + $0x18] sm:$0xff pattern:$0x75316420] }
  0x30   :  { %1282 = vmatpush.msk.msra.mxu2 %vm146_vm0, %v289_v59  ;;  %296 = vst [vmem:[#allocation1 + $0x10] ss:$2 sm:$0xff] %v233_v57  ;;  %1284 = vmatpush.msk.msra.mxu3 %vm146_vm0, %v290_v62  ;;  %v723_v48 = vld [vmem:[#allocation9 + $0x168] sm:$0xff]  ;;  %v690_v50 = vld [vmem:[#allocation9 + $0x60] sm:$0xff]  ;;  %v705_v55 = vld [vmem:[#allocation9 + $0xd8] sm:$0xff] }
  0x31   :  { %185 = vadd.xlane.f32.xlu1 %v184_v51  ;;  %v293_v2 = vld.sshfl [vmem:[#allocation1 + $0x30] sm:$0xff pattern:$0x75316420]  ;;  %v294_v4 = vld.sshfl [vmem:[#allocation1 + $0x38] sm:$0xff pattern:$0x75316420] }
  0x32   :  { %1290 = vmatpush.msk.msrb.mxu2 %vm146_vm0, %v293_v2  ;;  %298 = vst [vmem:[#allocation1 + $0x30] ss:$2 sm:$0xff] %v235_v3  ;;  %1292 = vmatpush.msk.msrb.mxu3 %vm146_vm0, %v294_v4  ;;  %v739_v49 = vld [vmem:[#allocation9 + $0x1e8] sm:$0xff]  ;;  %v706_v51 = vld [vmem:[#allocation9 + $0xe0] sm:$0xff]  ;;  %v721_v56 = vld [vmem:[#allocation9 + $0x158] sm:$0xff] }
  0x33   :  { %v299_v30 = vld.sshfl [vmem:[#allocation1] sm:$0xff pattern:$0x75316420]  ;;  %v300_v31 = vld.sshfl [vmem:[#allocation1 + $0x8] sm:$0xff pattern:$0x75316420] }
  0x34   :  { %v737_v57 = vld [vmem:[#allocation9 + $0x1d8] sm:$0xff]  ;;  %v688_v58 = vld [vmem:[#allocation9 + $0x50] sm:$0xff]  ;;  %v687_v62 = vld [vmem:[#allocation9 + $0x48] sm:$0xff] }
  0x35   :  { %v303_v34 = vld.sshfl [vmem:[#allocation1 + $0x20] sm:$0xff pattern:$0x75316420]  ;;  %v304_v35 = vld.sshfl [vmem:[#allocation1 + $0x28] sm:$0xff pattern:$0x75316420] }
  0x36   :  { %v704_v59 = vld [vmem:[#allocation9 + $0xd0] sm:$0xff]  ;;  %v703_v63 = vld [vmem:[#allocation9 + $0xc8] sm:$0xff]  ;;  %v686_v2 = vld [vmem:[#allocation9 + $0x40] sm:$0xff] }
  0x37   :  { %v301_v32 = vld.sshfl [vmem:[#allocation1 + $0x10] sm:$0xff pattern:$0x75316420]  ;;  %v302_v33 = vld.sshfl [vmem:[#allocation1 + $0x18] sm:$0xff pattern:$0x75316420] }
  0x38   :  { %v719_v0 = vld [vmem:[#allocation9 + $0x148] sm:$0xff]  ;;  %v702_v3 = vld [vmem:[#allocation9 + $0xc0] sm:$0xff] }
  0x39   :  { %v305_v36 = vld.sshfl [vmem:[#allocation1 + $0x30] sm:$0xff pattern:$0x75316420]  ;;  %v306_v37 = vld.sshfl [vmem:[#allocation1 + $0x38] sm:$0xff pattern:$0x75316420] }
  0x3a   :  { %v735_v1 = vld [vmem:[#allocation9 + $0x1c8] sm:$0xff]  ;;  %v718_v4 = vld [vmem:[#allocation9 + $0x140] sm:$0xff] }
  0x92   :  { %v151_v54 = vpop.xlane.xlu0 %150 }
  0x93   :  { %v197_v7 = vperm.slane %v151_v54, %v196_v60  ;;  %v689_v54 = vld [vmem:[#allocation9 + $0x58] sm:$0xff] }
  0x94   :  { %v161_v61 = vpop.xlane.xlu1 %160 }
  0x95   :  { %v199_v9 = vperm.slane %v161_v61, %v196_v60  ;;  %v736_v61 = vld [vmem:[#allocation9 + $0x1d0] sm:$0xff] }
  0x9a   :  { %v156_v5 = vpop.xlane.xlu0 %155  ;;  %v171_v6 = vpop.xlane.xlu2 %170 }
  0x9b   :  { %v198_v8 = vperm.slane %v156_v5, %v196_v60  ;;  %v201_v15 = vperm.slane %v171_v6, %v196_v60  ;;  %v734_v5 = vld [vmem:[#allocation9 + $0x1c0] sm:$0xff]  ;;  %v685_v6 = vld [vmem:[#allocation9 + $0x38] sm:$0xff] }
  0x9c   :  { %v166_v10 = vpop.xlane.xlu1 %165 }
  0x9d   :  { %v206_v11 = vsel %vm205_vm2, %v198_v8, %v197_v7  ;;  %v200_v12 = vperm.slane %v166_v10, %v196_v60  ;;  %v701_v7 = vld [vmem:[#allocation9 + $0xb8] sm:$0xff]  ;;  %v684_v10 = vld [vmem:[#allocation9 + $0x30] sm:$0xff] }
  0x9e   :  { %v208_v13 = vsel %vm207_vm3, %v199_v9, %v206_v11  ;;  %v717_v8 = vld [vmem:[#allocation9 + $0x138] sm:$0xff]  ;;  %v700_v11 = vld [vmem:[#allocation9 + $0xb0] sm:$0xff] }
  0x9f   :  { %v210_v14 = vsel %vm209_vm4, %v200_v12, %v208_v13  ;;  %v733_v9 = vld [vmem:[#allocation9 + $0x1b8] sm:$0xff]  ;;  %v716_v12 = vld [vmem:[#allocation9 + $0x130] sm:$0xff] }
  0xa0   :  { %v212_v20 = vsel %vm211_vm5, %v201_v15, %v210_v14  ;;  %v732_v13 = vld [vmem:[#allocation9 + $0x1b0] sm:$0xff]  ;;  %v683_v14 = vld [vmem:[#allocation9 + $0x28] sm:$0xff] }
  0xa1   :  { %v699_v15 = vld [vmem:[#allocation9 + $0xa8] sm:$0xff] }
  0xa2   :  { %v176_v16 = vpop.xlane.xlu2 %175  ;;  %v181_v17 = vpop.xlane.xlu0 %180 }
  0xa3   :  { %v202_v18 = vperm.slane %v176_v16, %v196_v60  ;;  %v203_v19 = vperm.slane %v181_v17, %v196_v60  ;;  %v715_v16 = vld [vmem:[#allocation9 + $0x128] sm:$0xff] }
  0xa4   :  { %v186_v21 = vpop.xlane.xlu1 %185  ;;  %v731_v17 = vld [vmem:[#allocation9 + $0x1a8] sm:$0xff] }
  0xa5   :  { %v214_v22 = vsel %vm213_vm6, %v202_v18, %v212_v20  ;;  %v204_v24 = vperm.slane %v186_v21, %v196_v60  ;;  %v720_v60 = vld [vmem:[#allocation9 + $0x150] sm:$0xff]  ;;  %v682_v18 = vld [vmem:[#allocation9 + $0x20] sm:$0xff] }
  0xa6   :  { %v216_v25 = vsel %vm215_vm7, %v203_v19, %v214_v22  ;;  %v698_v19 = vld [vmem:[#allocation9 + $0xa0] sm:$0xff]  ;;  %v681_v22 = vld [vmem:[#allocation9 + $0x18] sm:$0xff] }
  0xa7   :  { %v218_v26 = vsel %vm217_vm8, %v204_v24, %v216_v25  ;;  %v714_v20 = vld [vmem:[#allocation9 + $0x120] sm:$0xff]  ;;  %v713_v24 = vld [vmem:[#allocation9 + $0x118] sm:$0xff] }
  0xa8   :  { %v220_v27 = vadd.f32 %v218_v26, %v86_v23  ;;  %v730_v21 = vld [vmem:[#allocation9 + $0x1a0] sm:$0xff]  ;;  %v697_v23 = vld [vmem:[#allocation9 + $0x98] sm:$0xff]  ;;  %v680_v26 = vld [vmem:[#allocation9 + $0x10] sm:$0xff] }
  0xa9   :  { %v729_v25 = vld [vmem:[#allocation9 + $0x198] sm:$0xff] }
  0xaa   :  { %222 = vst.msk [vmem:[#allocation2] sm:$0xff] %vm84_vm1, %v220_v27  ;;  %v696_v27 = vld [vmem:[#allocation9 + $0x90] sm:$0xff] }
  0xb1   :  { %v226_v28 = vld [vmem:[#allocation2] sm:$0xff] }
  0xb2   :  { %v227_v29 = vmul.f32 0.00390625, %v226_v28  ;;  %v712_v28 = vld [vmem:[#allocation9 + $0x110] sm:$0xff] }
  0xb4   :  { %1279 = vmatmul.msk.f32.vlgmr.msra.gmra.mxu0 %vm84_vm1, %v227_v29  ;;  %1281 = vmatmul.msk.f32.vlgmr.msra.gmra.mxu1 %vm84_vm1, %v227_v29 }
  0xb5   :  { %1283 = vmatmul.msk.f32.vlgmr.msra.gmra.mxu2 %vm84_vm1, %v227_v29  ;;  %1285 = vmatmul.msk.f32.vlgmr.msra.gmra.mxu3 %vm84_vm1, %v227_v29 }
  0xb6   :  { %1294 = vmatpush.msk.msra.mxu0 %vm146_vm0, %v299_v30  ;;  %1296 = vmatpush.msk.msra.mxu1 %vm146_vm0, %v300_v31  ;;  %v679_v30 = vld [vmem:[#allocation9 + $0x8] sm:$0xff] }
  0xb7   :  { %1298 = vmatpush.msk.msra.mxu2 %vm146_vm0, %v301_v32  ;;  %1300 = vmatpush.msk.msra.mxu3 %vm146_vm0, %v302_v33  ;;  %v695_v31 = vld [vmem:[#allocation9 + $0x88] sm:$0xff] }
  0xb8   :  { %v711_v32 = vld [vmem:[#allocation9 + $0x108] sm:$0xff] }
  0xb9   :  { %v727_v33 = vld [vmem:[#allocation9 + $0x188] sm:$0xff] }
  0xbc   :  { %1287 = vmatmul.msk.f32.vlgmr.msrb.gmra.mxu0 %vm84_vm1, %v227_v29  ;;  %1289 = vmatmul.msk.f32.vlgmr.msrb.gmra.mxu1 %vm84_vm1, %v227_v29 }
  0xbd   :  { %1291 = vmatmul.msk.f32.vlgmr.msrb.gmra.mxu2 %vm84_vm1, %v227_v29  ;;  %1293 = vmatmul.msk.f32.vlgmr.msrb.gmra.mxu3 %vm84_vm1, %v227_v29 }
  0xbe   :  { %1302 = vmatpush.msk.msrb.mxu0 %vm146_vm0, %v303_v34  ;;  %1304 = vmatpush.msk.msrb.mxu1 %vm146_vm0, %v304_v35  ;;  %v678_v34 = vld [vmem:[#allocation9] sm:$0xff] }
  0xbf   :  { %1306 = vmatpush.msk.msrb.mxu2 %vm146_vm0, %v305_v36  ;;  %1308 = vmatpush.msk.msrb.mxu3 %vm146_vm0, %v306_v37  ;;  %v694_v35 = vld [vmem:[#allocation9 + $0x80] sm:$0xff]  ;;  %v757_v36 = vld [vmem:[#allocation9 + $0x278] sm:$0xff] }
  0xc0   :  { %v773_v37 = vld [vmem:[#allocation9 + $0x2f8] sm:$0xff] }
  0xc4   :  { %1295 = vmatmul.msk.f32.vlgmr.msra.gmra.mxu0 %vm84_vm1, %v227_v29  ;;  %1297 = vmatmul.msk.f32.vlgmr.msra.gmra.mxu1 %vm84_vm1, %v227_v29 }
  0xc5   :  { %1299 = vmatmul.msk.f32.vlgmr.msra.gmra.mxu2 %vm84_vm1, %v227_v29  ;;  %1301 = vmatmul.msk.f32.vlgmr.msra.gmra.mxu3 %vm84_vm1, %v227_v29 }
  0xc6   :  { %938 = vmatpush.msra.mxu0 %v693_v38  ;;  %958 = vmatpush.msra.mxu1 %v709_v39  ;;  %v710_v38 = vld [vmem:[#allocation9 + $0x100] sm:$0xff] }
  0xc7   :  { %978 = vmatpush.msra.mxu2 %v725_v40  ;;  %998 = vmatpush.msra.mxu3 %v741_v41  ;;  %v726_v39 = vld [vmem:[#allocation9 + $0x180] sm:$0xff]  ;;  %v756_v40 = vld [vmem:[#allocation9 + $0x270] sm:$0xff] }
  0xc8   :  { %939 = vmatpush.msra.mxu0 %v692_v42  ;;  %959 = vmatpush.msra.mxu1 %v708_v43  ;;  %v772_v41 = vld [vmem:[#allocation9 + $0x2f0] sm:$0xff]  ;;  %v789_v42 = vld [vmem:[#allocation9 + $0x378] sm:$0xff] }
  0xc9   :  { %979 = vmatpush.msra.mxu2 %v724_v44  ;;  %999 = vmatpush.msra.mxu3 %v740_v45  ;;  %v805_v43 = vld [vmem:[#allocation9 + $0x3f8] sm:$0xff]  ;;  %v755_v44 = vld [vmem:[#allocation9 + $0x268] sm:$0xff] }
  0xca   :  { %940 = vmatpush.msra.mxu0 %v691_v46  ;;  %960 = vmatpush.msra.mxu1 %v707_v47  ;;  %v771_v45 = vld [vmem:[#allocation9 + $0x2e8] sm:$0xff]  ;;  %v788_v46 = vld [vmem:[#allocation9 + $0x370] sm:$0xff] }
  0xcb   :  { %980 = vmatpush.msra.mxu2 %v723_v48  ;;  %1000 = vmatpush.msra.mxu3 %v739_v49  ;;  %v804_v47 = vld [vmem:[#allocation9 + $0x3f0] sm:$0xff]  ;;  %v754_v48 = vld [vmem:[#allocation9 + $0x260] sm:$0xff] }
  0xcc   :  { %1303 = vmatmul.msk.f32.vlgmr.msrb.gmra.mxu0 %vm84_vm1, %v227_v29  ;;  %1305 = vmatmul.msk.f32.vlgmr.msrb.gmra.mxu1 %vm84_vm1, %v227_v29  ;;  %v770_v49 = vld [vmem:[#allocation9 + $0x2e0] sm:$0xff] }
  0xcd   :  { %1307 = vmatmul.msk.f32.vlgmr.msrb.gmra.mxu2 %vm84_vm1, %v227_v29  ;;  %1309 = vmatmul.msk.f32.vlgmr.msrb.gmra.mxu3 %vm84_vm1, %v227_v29  ;;  %v728_v29 = vld [vmem:[#allocation9 + $0x190] sm:$0xff] }
  0xce   :  { %941 = vmatpush.msra.mxu0 %v690_v50  ;;  %961 = vmatpush.msra.mxu1 %v706_v51  ;;  %v787_v50 = vld [vmem:[#allocation9 + $0x368] sm:$0xff] }
  0xcf   :  { %981 = vmatpush.msra.mxu2 %v722_v52  ;;  %1001 = vmatpush.msra.mxu3 %v738_v53  ;;  %v803_v51 = vld [vmem:[#allocation9 + $0x3e8] sm:$0xff]  ;;  %v753_v52 = vld [vmem:[#allocation9 + $0x258] sm:$0xff] }
  0xd0   :  { %942 = vmatpush.msra.mxu0 %v689_v54  ;;  %962 = vmatpush.msra.mxu1 %v705_v55  ;;  %v769_v53 = vld [vmem:[#allocation9 + $0x2d8] sm:$0xff]  ;;  %v786_v54 = vld [vmem:[#allocation9 + $0x360] sm:$0xff] }
  0xd1   :  { %982 = vmatpush.msra.mxu2 %v721_v56  ;;  %1002 = vmatpush.msra.mxu3 %v737_v57  ;;  %v802_v55 = vld [vmem:[#allocation9 + $0x3e0] sm:$0xff]  ;;  %v752_v56 = vld [vmem:[#allocation9 + $0x250] sm:$0xff] }
  0xd2   :  { %943 = vmatpush.msra.mxu0 %v688_v58  ;;  %963 = vmatpush.msra.mxu1 %v704_v59  ;;  %v768_v57 = vld [vmem:[#allocation9 + $0x2d0] sm:$0xff]  ;;  %v785_v58 = vld [vmem:[#allocation9 + $0x358] sm:$0xff] }
  0xd3   :  { %983 = vmatpush.msra.mxu2 %v720_v60  ;;  %1003 = vmatpush.msra.mxu3 %v736_v61  ;;  %v801_v59 = vld [vmem:[#allocation9 + $0x3d8] sm:$0xff]  ;;  %v751_v60 = vld [vmem:[#allocation9 + $0x248] sm:$0xff] }
  0xd4   :  { %944 = vmatpush.msra.mxu0 %v687_v62  ;;  %964 = vmatpush.msra.mxu1 %v703_v63  ;;  %v767_v61 = vld [vmem:[#allocation9 + $0x2c8] sm:$0xff]  ;;  %v784_v62 = vld [vmem:[#allocation9 + $0x350] sm:$0xff] }
  0xd5   :  { %984 = vmatpush.msra.mxu2 %v719_v0  ;;  %1004 = vmatpush.msra.mxu3 %v735_v1  ;;  %v800_v63 = vld [vmem:[#allocation9 + $0x3d0] sm:$0xff]  ;;  %v750_v0 = vld [vmem:[#allocation9 + $0x240] sm:$0xff] }
  0xd6   :  { %945 = vmatpush.msra.mxu0 %v686_v2  ;;  %965 = vmatpush.msra.mxu1 %v702_v3  ;;  %v766_v1 = vld [vmem:[#allocation9 + $0x2c0] sm:$0xff]  ;;  %v783_v2 = vld [vmem:[#allocation9 + $0x348] sm:$0xff] }
  0xd7   :  { %985 = vmatpush.msra.mxu2 %v718_v4  ;;  %1005 = vmatpush.msra.mxu3 %v734_v5  ;;  %v799_v3 = vld [vmem:[#allocation9 + $0x3c8] sm:$0xff]  ;;  %v749_v4 = vld [vmem:[#allocation9 + $0x238] sm:$0xff] }
  0xd8   :  { %946 = vmatpush.msra.mxu0 %v685_v6  ;;  %966 = vmatpush.msra.mxu1 %v701_v7  ;;  %v765_v5 = vld [vmem:[#allocation9 + $0x2b8] sm:$0xff]  ;;  %v782_v6 = vld [vmem:[#allocation9 + $0x340] sm:$0xff] }
  0xd9   :  { %986 = vmatpush.msra.mxu2 %v717_v8  ;;  %1006 = vmatpush.msra.mxu3 %v733_v9  ;;  %v798_v7 = vld [vmem:[#allocation9 + $0x3c0] sm:$0xff]  ;;  %v748_v8 = vld [vmem:[#allocation9 + $0x230] sm:$0xff] }
  0xda   :  { %947 = vmatpush.msra.mxu0 %v684_v10  ;;  %967 = vmatpush.msra.mxu1 %v700_v11  ;;  %v764_v9 = vld [vmem:[#allocation9 + $0x2b0] sm:$0xff]  ;;  %v781_v10 = vld [vmem:[#allocation9 + $0x338] sm:$0xff] }
  0xdb   :  { %987 = vmatpush.msra.mxu2 %v716_v12  ;;  %1007 = vmatpush.msra.mxu3 %v732_v13  ;;  %v797_v11 = vld [vmem:[#allocation9 + $0x3b8] sm:$0xff]  ;;  %v747_v12 = vld [vmem:[#allocation9 + $0x228] sm:$0xff] }
  0xdc   :  { %948 = vmatpush.msra.mxu0 %v683_v14  ;;  %968 = vmatpush.msra.mxu1 %v699_v15  ;;  %v763_v13 = vld [vmem:[#allocation9 + $0x2a8] sm:$0xff]  ;;  %v780_v14 = vld [vmem:[#allocation9 + $0x330] sm:$0xff] }
  0xdd   :  { %988 = vmatpush.msra.mxu2 %v715_v16  ;;  %1008 = vmatpush.msra.mxu3 %v731_v17  ;;  %v796_v15 = vld [vmem:[#allocation9 + $0x3b0] sm:$0xff]  ;;  %v746_v16 = vld [vmem:[#allocation9 + $0x220] sm:$0xff] }
  0xde   :  { %949 = vmatpush.msra.mxu0 %v682_v18  ;;  %969 = vmatpush.msra.mxu1 %v698_v19  ;;  %v762_v17 = vld [vmem:[#allocation9 + $0x2a0] sm:$0xff]  ;;  %v745_v18 = vld [vmem:[#allocation9 + $0x218] sm:$0xff] }
  0xdf   :  { %989 = vmatpush.msra.mxu2 %v714_v20  ;;  %1009 = vmatpush.msra.mxu3 %v730_v21  ;;  %v761_v19 = vld [vmem:[#allocation9 + $0x298] sm:$0xff]  ;;  %v744_v20 = vld [vmem:[#allocation9 + $0x210] sm:$0xff] }
  0xe0   :  { %950 = vmatpush.msra.mxu0 %v681_v22  ;;  %970 = vmatpush.msra.mxu1 %v697_v23  ;;  %v760_v21 = vld [vmem:[#allocation9 + $0x290] sm:$0xff]  ;;  %v779_v22 = vld [vmem:[#allocation9 + $0x328] sm:$0xff] }
  0xe1   :  { %990 = vmatpush.msra.mxu2 %v713_v24  ;;  %1010 = vmatpush.msra.mxu3 %v729_v25  ;;  %v795_v23 = vld [vmem:[#allocation9 + $0x3a8] sm:$0xff] }
  0xe2   :  { %951 = vmatpush.msra.mxu0 %v680_v26  ;;  %971 = vmatpush.msra.mxu1 %v696_v27  ;;  %v743_v24 = vld [vmem:[#allocation9 + $0x208] sm:$0xff]  ;;  %v778_v26 = vld [vmem:[#allocation9 + $0x320] sm:$0xff] }
  0xe3   :  { %991 = vmatpush.msra.mxu2 %v712_v28  ;;  %1011 = vmatpush.msra.mxu3 %v728_v29  ;;  %v759_v25 = vld [vmem:[#allocation9 + $0x288] sm:$0xff]  ;;  %v794_v27 = vld [vmem:[#allocation9 + $0x3a0] sm:$0xff] }
  0xe4   :  { %952 = vmatpush.msra.mxu0 %v679_v30  ;;  %972 = vmatpush.msra.mxu1 %v695_v31  ;;  %v742_v28 = vld [vmem:[#allocation9 + $0x200] sm:$0xff]  ;;  %v777_v30 = vld [vmem:[#allocation9 + $0x318] sm:$0xff] }
  0xe5   :  { %992 = vmatpush.msra.mxu2 %v711_v32  ;;  %1012 = vmatpush.msra.mxu3 %v727_v33  ;;  %v758_v29 = vld [vmem:[#allocation9 + $0x280] sm:$0xff]  ;;  %v793_v31 = vld [vmem:[#allocation9 + $0x398] sm:$0xff]  ;;  %v776_v32 = vld [vmem:[#allocation9 + $0x310] sm:$0xff] }
  0xe6   :  { %953 = vmatpush.msra.mxu0 %v678_v34  ;;  %973 = vmatpush.msra.mxu1 %v694_v35  ;;  %v792_v33 = vld [vmem:[#allocation9 + $0x390] sm:$0xff]  ;;  %v775_v34 = vld [vmem:[#allocation9 + $0x308] sm:$0xff] }
  0xe7   :  { %993 = vmatpush.msra.mxu2 %v710_v38  ;;  %1013 = vmatpush.msra.mxu3 %v726_v39  ;;  %v791_v35 = vld [vmem:[#allocation9 + $0x388] sm:$0xff]  ;;  %v1547_v38 = vld [vmem:[#allocation8] sm:$0xff] }
  0xe8   :  { %1018 = vmatpush.msrb.mxu0 %v757_v36  ;;  %1038 = vmatpush.msrb.mxu1 %v773_v37  ;;  %v774_v36 = vld [vmem:[#allocation9 + $0x300] sm:$0xff]  ;;  %v240_v39 = vperm.slane %v1547_v38, 0 }
  0xe9   :  { %1058 = vmatpush.msrb.mxu2 %v789_v42  ;;  %1078 = vmatpush.msrb.mxu3 %v805_v43  ;;  %v790_v37 = vld [vmem:[#allocation9 + $0x380] sm:$0xff] }
  0xea   :  { %1019 = vmatpush.msrb.mxu0 %v756_v40  ;;  %1039 = vmatpush.msrb.mxu1 %v772_v41  ;;  %v241_v40 = vperm.slane %v1547_v38, 1 }
  0xeb   :  { %1059 = vmatpush.msrb.mxu2 %v788_v46  ;;  %1079 = vmatpush.msrb.mxu3 %v804_v47  ;;  %v821_v47 = vld [vmem:[#allocation9 + $0x478] sm:$0xff] }
  0xec   :  { %1020 = vmatpush.msrb.mxu0 %v755_v44  ;;  %1040 = vmatpush.msrb.mxu1 %v771_v45 }
  0xed   :  { %1060 = vmatpush.msrb.mxu2 %v787_v50  ;;  %1080 = vmatpush.msrb.mxu3 %v803_v51  ;;  %v243_v50 = vperm.slane %v1547_v38, 3  ;;  %v820_v51 = vld [vmem:[#allocation9 + $0x470] sm:$0xff] }
  0xee   :  { %1021 = vmatpush.msrb.mxu0 %v754_v48  ;;  %1041 = vmatpush.msrb.mxu1 %v770_v49  ;;  %v837_v48 = vld [vmem:[#allocation9 + $0x4f8] sm:$0xff]  ;;  %v242_v49 = vperm.slane %v1547_v38, 2 }
  0xef   :  { %1061 = vmatpush.msrb.mxu2 %v786_v54  ;;  %1081 = vmatpush.msrb.mxu3 %v802_v55  ;;  %v245_v54 = vperm.slane %v1547_v38, 5 }
  0xf0   :  { %1022 = vmatpush.msrb.mxu0 %v753_v52  ;;  %1042 = vmatpush.msrb.mxu1 %v769_v53  ;;  %v836_v52 = vld [vmem:[#allocation9 + $0x4f0] sm:$0xff]  ;;  %v244_v53 = vperm.slane %v1547_v38, 4 }
  0xf1   :  { %1062 = vmatpush.msrb.mxu2 %v785_v58  ;;  %1082 = vmatpush.msrb.mxu3 %v801_v59  ;;  %v835_v58 = vld [vmem:[#allocation9 + $0x4e8] sm:$0xff] }
  0xf2   :  { %1023 = vmatpush.msrb.mxu0 %v752_v56  ;;  %1043 = vmatpush.msrb.mxu1 %v768_v57  ;;  %v819_v57 = vld [vmem:[#allocation9 + $0x468] sm:$0xff] }
  0xf3   :  { %1063 = vmatpush.msrb.mxu2 %v784_v62  ;;  %1083 = vmatpush.msrb.mxu3 %v800_v63 }
  0xf4   :  { %1024 = vmatpush.msrb.mxu0 %v751_v60  ;;  %1044 = vmatpush.msrb.mxu1 %v767_v61 }
  0xf5   :  { %1064 = vmatpush.msrb.mxu2 %v783_v2  ;;  %1084 = vmatpush.msrb.mxu3 %v799_v3  ;;  %v818_v3 = vld [vmem:[#allocation9 + $0x460] sm:$0xff] }
  0xf6   :  { %1025 = vmatpush.msrb.mxu0 %v750_v0  ;;  %1045 = vmatpush.msrb.mxu1 %v766_v1 }
  0xf7   :  { %1065 = vmatpush.msrb.mxu2 %v782_v6  ;;  %1085 = vmatpush.msrb.mxu3 %v798_v7  ;;  %v853_v7 = vld [vmem:[#allocation9 + $0x578] sm:$0xff] }
  0xf8   :  { %1026 = vmatpush.msrb.mxu0 %v749_v4  ;;  %1046 = vmatpush.msrb.mxu1 %v765_v5  ;;  %v834_v4 = vld [vmem:[#allocation9 + $0x4e0] sm:$0xff] }
  0xf9   :  { %1066 = vmatpush.msrb.mxu2 %v781_v10  ;;  %1086 = vmatpush.msrb.mxu3 %v797_v11  ;;  %v247_v10 = vperm.slane %v1547_v38, 7  ;;  %v817_v11 = vld [vmem:[#allocation9 + $0x458] sm:$0xff] }
  0xfa   :  { %1027 = vmatpush.msrb.mxu0 %v748_v8  ;;  %1047 = vmatpush.msrb.mxu1 %v764_v9  ;;  %v869_v8 = vld [vmem:[#allocation9 + $0x5f8] sm:$0xff]  ;;  %v246_v9 = vperm.slane %v1547_v38, 6  ;;  %v828_v38 = vld [vmem:[#allocation9 + $0x4b0] sm:$0xff] }
  0xfb   :  { %1067 = vmatpush.msrb.mxu2 %v780_v14  ;;  %1087 = vmatpush.msrb.mxu3 %v796_v15  ;;  %v868_v14 = vld [vmem:[#allocation9 + $0x5f0] sm:$0xff] }
  0xfc   :  { %1028 = vmatpush.msrb.mxu0 %v747_v12  ;;  %1048 = vmatpush.msrb.mxu1 %v763_v13  ;;  %v833_v12 = vld [vmem:[#allocation9 + $0x4d8] sm:$0xff]  ;;  %v852_v13 = vld [vmem:[#allocation9 + $0x570] sm:$0xff] }
  0xfd   :  { %1068 = vmatpush.msrb.mxu2 %v779_v22  ;;  %1088 = vmatpush.msrb.mxu3 %v795_v23  ;;  %v867_v22 = vld [vmem:[#allocation9 + $0x5e8] sm:$0xff] }
  0xfe   :  { %1029 = vmatpush.msrb.mxu0 %v746_v16  ;;  %1049 = vmatpush.msrb.mxu1 %v762_v17  ;;  %v816_v17 = vld [vmem:[#allocation9 + $0x450] sm:$0xff]  ;;  %v815_v23 = vld [vmem:[#allocation9 + $0x448] sm:$0xff] }
  0xff   :  { %1069 = vmatpush.msrb.mxu2 %v778_v26  ;;  %1089 = vmatpush.msrb.mxu3 %v794_v27  ;;  %v850_v27 = vld [vmem:[#allocation9 + $0x560] sm:$0xff] }
 0x100   :  { %1030 = vmatpush.msrb.mxu0 %v745_v18  ;;  %1050 = vmatpush.msrb.mxu1 %v761_v19  ;;  %v832_v18 = vld [vmem:[#allocation9 + $0x4d0] sm:$0xff] }
 0x101   :  { %1070 = vmatpush.msrb.mxu2 %v777_v30  ;;  %1090 = vmatpush.msrb.mxu3 %v793_v31  ;;  %v830_v30 = vld [vmem:[#allocation9 + $0x4c0] sm:$0xff]  ;;  %v849_v31 = vld [vmem:[#allocation9 + $0x558] sm:$0xff] }
 0x102   :  { %1031 = vmatpush.msrb.mxu0 %v744_v20  ;;  %1051 = vmatpush.msrb.mxu1 %v760_v21  ;;  %v851_v21 = vld [vmem:[#allocation9 + $0x568] sm:$0xff] }
 0x103   :  { %1071 = vmatpush.msrb.mxu2 %v776_v32  ;;  %1091 = vmatpush.msrb.mxu3 %v792_v33  ;;  %v865_v32 = vld [vmem:[#allocation9 + $0x5d8] sm:$0xff] }
 0x104   :  { %1032 = vmatpush.msrb.mxu0 %v743_v24  ;;  %1052 = vmatpush.msrb.mxu1 %v759_v25  ;;  %v831_v24 = vld [vmem:[#allocation9 + $0x4c8] sm:$0xff]  ;;  %v813_v33 = vld [vmem:[#allocation9 + $0x438] sm:$0xff] }
 0x105   :  { %1072 = vmatpush.msrb.mxu2 %v775_v34  ;;  %1092 = vmatpush.msrb.mxu3 %v791_v35  ;;  %v829_v34 = vld [vmem:[#allocation9 + $0x4b8] sm:$0xff]  ;;  %v848_v35 = vld [vmem:[#allocation9 + $0x550] sm:$0xff] }
 0x106   :  { %1033 = vmatpush.msrb.mxu0 %v742_v28  ;;  %1053 = vmatpush.msrb.mxu1 %v758_v29  ;;  %v866_v28 = vld [vmem:[#allocation9 + $0x5e0] sm:$0xff] }
 0x107   :  { %1073 = vmatpush.msrb.mxu2 %v774_v36  ;;  %1093 = vmatpush.msrb.mxu3 %v790_v37  ;;  %v814_v29 = vld [vmem:[#allocation9 + $0x440] sm:$0xff]  ;;  %v864_v36 = vld [vmem:[#allocation9 + $0x5d0] sm:$0xff] }
 0x108   :  { %v812_v37 = vld [vmem:[#allocation9 + $0x430] sm:$0xff] }
 0x131   :  { %v359_v41 = vpop.f32.mrf.mxu0  ;;  %v379_v42 = vpop.f32.mrf.mxu1 }
 0x132   :  { %v360_v43 = vadd.f32 %v359_v41, %v240_v39  ;;  %v380_v44 = vadd.f32 %v379_v42, %v241_v40  ;;  %v847_v39 = vld [vmem:[#allocation9 + $0x548] sm:$0xff] }
 0x133   :  { %v863_v40 = vld [vmem:[#allocation9 + $0x5c8] sm:$0xff] }
 0x134   :  { %v662_v45 = vmax.f32 %v360_v43, 0.0  ;;  %v663_v46 = vmax.f32 %v380_v44, 0.0  ;;  %v811_v41 = vld [vmem:[#allocation9 + $0x428] sm:$0xff]  ;;  %v846_v43 = vld [vmem:[#allocation9 + $0x540] sm:$0xff] }
 0x135   :  { %v827_v42 = vld [vmem:[#allocation9 + $0x4a8] sm:$0xff]  ;;  %v862_v44 = vld [vmem:[#allocation9 + $0x5c0] sm:$0xff] }
 0x136   :  { %954 = vmatmul.f32.vlgmr.msra.gmra.mxu0 %v662_v45  ;;  %974 = vmatmul.f32.vlgmr.msra.gmra.mxu1 %v663_v46  ;;  %v1557_v45 = vld [vmem:[#allocation8 + $0x8] sm:$0xff]  ;;  %v810_v46 = vld [vmem:[#allocation9 + $0x420] sm:$0xff] }
 0x137   :  { %1098 = vmatpush.msra.mxu0 %v821_v47  ;;  %1118 = vmatpush.msra.mxu1 %v837_v48  ;;  %v826_v47 = vld [vmem:[#allocation9 + $0x4a0] sm:$0xff]  ;;  %v845_v48 = vld [vmem:[#allocation9 + $0x538] sm:$0xff] }
 0x138   :  { %v399_v55 = vpop.f32.mrf.mxu2  ;;  %v419_v56 = vpop.f32.mrf.mxu3 }
 0x139   :  { %v400_v59 = vadd.f32 %v399_v55, %v242_v49  ;;  %v420_v60 = vadd.f32 %v419_v56, %v243_v50  ;;  %1099 = vmatpush.msra.mxu0 %v820_v51  ;;  %1119 = vmatpush.msra.mxu1 %v836_v52  ;;  %v439_v61 = vpop.f32.mrf.mxu0  ;;  %v459_v62 = vpop.f32.mrf.mxu1  ;;  %v861_v49 = vld [vmem:[#allocation9 + $0x5b8] sm:$0xff]  ;;  %v248_v52 = vperm.slane %v1557_v45, 0  ;;  %v860_v55 = vld [vmem:[#allocation9 + $0x5b0] sm:$0xff] }
 0x13a   :  { %v440_v63 = vadd.f32 %v439_v61, %v244_v53  ;;  %v460_v0 = vadd.f32 %v459_v62, %v245_v54  ;;  %v809_v50 = vld [vmem:[#allocation9 + $0x418] sm:$0xff]  ;;  %v249_v53 = vperm.slane %v1557_v45, 1  ;;  %v844_v54 = vld [vmem:[#allocation9 + $0x530] sm:$0xff]  ;;  %v859_v61 = vld [vmem:[#allocation9 + $0x5a8] sm:$0xff] }
 0x13b   :  { %v664_v1 = vmax.f32 %v400_v59, 0.0  ;;  %v665_v2 = vmax.f32 %v420_v60, 0.0  ;;  %1100 = vmatpush.msra.mxu0 %v819_v57  ;;  %1120 = vmatpush.msra.mxu1 %v835_v58  ;;  %v825_v51 = vld [vmem:[#allocation9 + $0x498] sm:$0xff]  ;;  %v808_v58 = vld [vmem:[#allocation9 + $0x410] sm:$0xff]  ;;  %v843_v60 = vld [vmem:[#allocation9 + $0x528] sm:$0xff] }
 0x13c   :  { %v666_v5 = vmax.f32 %v440_v63, 0.0  ;;  %v667_v6 = vmax.f32 %v460_v0, 0.0  ;;  %v824_v59 = vld [vmem:[#allocation9 + $0x490] sm:$0xff]  ;;  %v807_v62 = vld [vmem:[#allocation9 + $0x408] sm:$0xff] }
 0x13d   :  { %994 = vmatmul.f32.vlgmr.msra.gmra.mxu2 %v664_v1  ;;  %1014 = vmatmul.f32.vlgmr.msra.gmra.mxu3 %v665_v2  ;;  %v823_v63 = vld [vmem:[#allocation9 + $0x488] sm:$0xff]  ;;  %v842_v2 = vld [vmem:[#allocation9 + $0x520] sm:$0xff] }
 0x13e   :  { %1101 = vmatpush.msra.mxu0 %v818_v3  ;;  %1121 = vmatpush.msra.mxu1 %v834_v4  ;;  %v858_v3 = vld [vmem:[#allocation9 + $0x5a0] sm:$0xff] }
 0x13f   :  { %1138 = vmatpush.msra.mxu2 %v853_v7  ;;  %1158 = vmatpush.msra.mxu3 %v869_v8  ;;  %v806_v4 = vld [vmem:[#allocation9 + $0x400] sm:$0xff]  ;;  %v857_v7 = vld [vmem:[#allocation9 + $0x598] sm:$0xff]  ;;  %v250_v8 = vperm.slane %v1557_v45, 2 }
 0x140   :  { %1034 = vmatmul.f32.vlgmr.msrb.gmra.mxu0 %v666_v5  ;;  %1054 = vmatmul.f32.vlgmr.msrb.gmra.mxu1 %v667_v6  ;;  %v479_v15 = vpop.f32.mrf.mxu2  ;;  %v499_v16 = vpop.f32.mrf.mxu3  ;;  %v822_v5 = vld [vmem:[#allocation9 + $0x480] sm:$0xff]  ;;  %v841_v6 = vld [vmem:[#allocation9 + $0x518] sm:$0xff] }
 0x141   :  { %1102 = vmatpush.msra.mxu0 %v817_v11  ;;  %1122 = vmatpush.msra.mxu1 %v833_v12  ;;  %v480_v19 = vadd.f32 %v479_v15, %v246_v9  ;;  %v500_v20 = vadd.f32 %v499_v16, %v247_v10  ;;  %v519_v56 = vpop.f32.mrf.mxu0  ;;  %v539_v57 = vpop.f32.mrf.mxu1  ;;  %v251_v9 = vperm.slane %v1557_v45, 3  ;;  %v901_v15 = vld [vmem:[#allocation9 + $0x6f8] sm:$0xff]  ;;  %v840_v16 = vld [vmem:[#allocation9 + $0x510] sm:$0xff] }
 0x142   :  { %1139 = vmatpush.msra.mxu2 %v852_v13  ;;  %1159 = vmatpush.msra.mxu3 %v868_v14  ;;  %v520_v0 = vadd.f32 %v519_v56, %v248_v52  ;;  %v540_v1 = vadd.f32 %v539_v57, %v249_v53  ;;  %v885_v14 = vld [vmem:[#allocation9 + $0x678] sm:$0xff]  ;;  %v912_v53 = vld [vmem:[#allocation9 + $0x750] sm:$0xff]  ;;  %v911_v57 = vld [vmem:[#allocation9 + $0x748] sm:$0xff] }
 0x143   :  { %v668_v25 = vmax.f32 %v480_v19, 0.0  ;;  %v669_v26 = vmax.f32 %v500_v20, 0.0  ;;  %1103 = vmatpush.msra.mxu0 %v816_v17  ;;  %1123 = vmatpush.msra.mxu1 %v832_v18  ;;  %v856_v17 = vld [vmem:[#allocation9 + $0x590] sm:$0xff]  ;;  %v893_v52 = vld [vmem:[#allocation9 + $0x6b8] sm:$0xff] }
 0x144   :  { %1140 = vmatpush.msra.mxu2 %v851_v21  ;;  %1160 = vmatpush.msra.mxu3 %v867_v22  ;;  %v670_v10 = vmax.f32 %v520_v0, 0.0  ;;  %v671_v11 = vmax.f32 %v540_v1, 0.0  ;;  %v884_v18 = vld [vmem:[#allocation9 + $0x670] sm:$0xff]  ;;  %v839_v22 = vld [vmem:[#allocation9 + $0x508] sm:$0xff]  ;;  %v890_v0 = vld [vmem:[#allocation9 + $0x6a0] sm:$0xff] }
 0x145   :  { %1104 = vmatpush.msra.mxu0 %v815_v23  ;;  %1124 = vmatpush.msra.mxu1 %v831_v24  ;;  %v900_v19 = vld [vmem:[#allocation9 + $0x6f0] sm:$0xff]  ;;  %v855_v23 = vld [vmem:[#allocation9 + $0x588] sm:$0xff]  ;;  %v909_v1 = vld [vmem:[#allocation9 + $0x738] sm:$0xff] }
 0x146   :  { %1141 = vmatpush.msra.mxu2 %v850_v27  ;;  %1161 = vmatpush.msra.mxu3 %v866_v28  ;;  %v883_v24 = vld [vmem:[#allocation9 + $0x668] sm:$0xff]  ;;  %v854_v27 = vld [vmem:[#allocation9 + $0x580] sm:$0xff]  ;;  %v892_v56 = vld [vmem:[#allocation9 + $0x6b0] sm:$0xff] }
 0x147   :  { %1074 = vmatmul.f32.vlgmr.msrb.gmra.mxu2 %v668_v25  ;;  %1094 = vmatmul.f32.vlgmr.msrb.gmra.mxu3 %v669_v26  ;;  %v899_v25 = vld [vmem:[#allocation9 + $0x6e8] sm:$0xff]  ;;  %v838_v26 = vld [vmem:[#allocation9 + $0x500] sm:$0xff] }
 0x148   :  { %1105 = vmatpush.msra.mxu0 %v814_v29  ;;  %1125 = vmatpush.msra.mxu1 %v830_v30  ;;  %v559_v12 = vpop.f32.mrf.mxu2  ;;  %v579_v13 = vpop.f32.mrf.mxu3  ;;  %v882_v30 = vld [vmem:[#allocation9 + $0x660] sm:$0xff] }
 0x149   :  { %1142 = vmatpush.msra.mxu2 %v849_v31  ;;  %1162 = vmatpush.msra.mxu3 %v865_v32  ;;  %v560_v20 = vadd.f32 %v559_v12, %v250_v8  ;;  %v580_v21 = vadd.f32 %v579_v13, %v251_v9  ;;  %v898_v31 = vld [vmem:[#allocation9 + $0x6e0] sm:$0xff]  ;;  %v917_v32 = vld [vmem:[#allocation9 + $0x778] sm:$0xff]  ;;  %v924_v8 = vld [vmem:[#allocation9 + $0x7b0] sm:$0xff]  ;;  %v599_v9 = vpop.f32.mrf.mxu0 }
 0x14a   :  { %1106 = vmatpush.msra.mxu0 %v813_v33  ;;  %1126 = vmatpush.msra.mxu1 %v829_v34  ;;  %v933_v33 = vld [vmem:[#allocation9 + $0x7f8] sm:$0xff]  ;;  %v888_v12 = vld [vmem:[#allocation9 + $0x690] sm:$0xff]  ;;  %v907_v13 = vld [vmem:[#allocation9 + $0x728] sm:$0xff] }
 0x14b   :  { %1143 = vmatpush.msra.mxu2 %v848_v35  ;;  %1163 = vmatpush.msra.mxu3 %v864_v36  ;;  %v672_v28 = vmax.f32 %v560_v20, 0.0  ;;  %v673_v29 = vmax.f32 %v580_v21, 0.0  ;;  %v881_v34 = vld [vmem:[#allocation9 + $0x658] sm:$0xff]  ;;  %v916_v36 = vld [vmem:[#allocation9 + $0x770] sm:$0xff]  ;;  %v922_v20 = vld [vmem:[#allocation9 + $0x7a0] sm:$0xff] }
 0x14c   :  { %1107 = vmatpush.msra.mxu0 %v812_v37  ;;  %1127 = vmatpush.msra.mxu1 %v828_v38  ;;  %v897_v35 = vld [vmem:[#allocation9 + $0x6d8] sm:$0xff]  ;;  %v932_v37 = vld [vmem:[#allocation9 + $0x7f0] sm:$0xff]  ;;  %v870_v21 = vld [vmem:[#allocation9 + $0x600] sm:$0xff] }
 0x14d   :  { %1144 = vmatpush.msra.mxu2 %v847_v39  ;;  %1164 = vmatpush.msra.mxu3 %v863_v40  ;;  %v880_v38 = vld [vmem:[#allocation9 + $0x650] sm:$0xff]  ;;  %v915_v40 = vld [vmem:[#allocation9 + $0x768] sm:$0xff] }
 0x14e   :  { %1108 = vmatpush.msra.mxu0 %v811_v41  ;;  %1128 = vmatpush.msra.mxu1 %v827_v42  ;;  %v896_v39 = vld [vmem:[#allocation9 + $0x6d0] sm:$0xff]  ;;  %v931_v41 = vld [vmem:[#allocation9 + $0x7e8] sm:$0xff] }
 0x14f   :  { %1145 = vmatpush.msra.mxu2 %v846_v43  ;;  %1165 = vmatpush.msra.mxu3 %v862_v44  ;;  %v879_v42 = vld [vmem:[#allocation9 + $0x648] sm:$0xff]  ;;  %v914_v44 = vld [vmem:[#allocation9 + $0x760] sm:$0xff] }
 0x150   :  { %1109 = vmatpush.msra.mxu0 %v810_v46  ;;  %1129 = vmatpush.msra.mxu1 %v826_v47  ;;  %v895_v43 = vld [vmem:[#allocation9 + $0x6c8] sm:$0xff]  ;;  %v930_v46 = vld [vmem:[#allocation9 + $0x7e0] sm:$0xff] }
 0x151   :  { %1146 = vmatpush.msra.mxu2 %v845_v48  ;;  %1166 = vmatpush.msra.mxu3 %v861_v49  ;;  %v878_v47 = vld [vmem:[#allocation9 + $0x640] sm:$0xff]  ;;  %v913_v49 = vld [vmem:[#allocation9 + $0x758] sm:$0xff] }
 0x152   :  { %1110 = vmatpush.msra.mxu0 %v809_v50  ;;  %1130 = vmatpush.msra.mxu1 %v825_v51  ;;  %v894_v48 = vld [vmem:[#allocation9 + $0x6c0] sm:$0xff]  ;;  %v929_v50 = vld [vmem:[#allocation9 + $0x7d8] sm:$0xff] }
 0x153   :  { %1147 = vmatpush.msra.mxu2 %v844_v54  ;;  %1167 = vmatpush.msra.mxu3 %v860_v55  ;;  %v877_v51 = vld [vmem:[#allocation9 + $0x638] sm:$0xff]  ;;  %v928_v54 = vld [vmem:[#allocation9 + $0x7d0] sm:$0xff] }
 0x154   :  { %1111 = vmatpush.msra.mxu0 %v808_v58  ;;  %1131 = vmatpush.msra.mxu1 %v824_v59  ;;  %v876_v55 = vld [vmem:[#allocation9 + $0x630] sm:$0xff]  ;;  %v927_v58 = vld [vmem:[#allocation9 + $0x7c8] sm:$0xff] }
 0x155   :  { %1148 = vmatpush.msra.mxu2 %v843_v60  ;;  %1168 = vmatpush.msra.mxu3 %v859_v61  ;;  %v875_v59 = vld [vmem:[#allocation9 + $0x628] sm:$0xff]  ;;  %v910_v61 = vld [vmem:[#allocation9 + $0x740] sm:$0xff] }
 0x156   :  { %1112 = vmatpush.msra.mxu0 %v807_v62  ;;  %1132 = vmatpush.msra.mxu1 %v823_v63  ;;  %v891_v60 = vld [vmem:[#allocation9 + $0x6a8] sm:$0xff]  ;;  %v926_v62 = vld [vmem:[#allocation9 + $0x7c0] sm:$0xff] }
 0x157   :  { %1149 = vmatpush.msra.mxu2 %v842_v2  ;;  %1169 = vmatpush.msra.mxu3 %v858_v3  ;;  %v874_v63 = vld [vmem:[#allocation9 + $0x620] sm:$0xff]  ;;  %v925_v2 = vld [vmem:[#allocation9 + $0x7b8] sm:$0xff] }
 0x158   :  { %1113 = vmatpush.msra.mxu0 %v806_v4  ;;  %1133 = vmatpush.msra.mxu1 %v822_v5  ;;  %v873_v3 = vld [vmem:[#allocation9 + $0x618] sm:$0xff]  ;;  %v252_v5 = vperm.slane %v1557_v45, 4 }
 0x159   :  { %1150 = vmatpush.msra.mxu2 %v841_v6  ;;  %1170 = vmatpush.msra.mxu3 %v857_v7  ;;  %v889_v4 = vld [vmem:[#allocation9 + $0x698] sm:$0xff]  ;;  %v253_v6 = vperm.slane %v1557_v45, 5  ;;  %v908_v7 = vld [vmem:[#allocation9 + $0x730] sm:$0xff] }
 0x15a   :  { %1114 = vmatmul.f32.vlgmr.msra.gmra.mxu0 %v670_v10  ;;  %1134 = vmatmul.f32.vlgmr.msra.gmra.mxu1 %v671_v11  ;;  %v619_v10 = vpop.f32.mrf.mxu1  ;;  %v872_v11 = vld [vmem:[#allocation9 + $0x610] sm:$0xff] }
 0x15b   :  { %1178 = vmatpush.msrb.mxu0 %v885_v14  ;;  %1198 = vmatpush.msrb.mxu1 %v901_v15  ;;  %v923_v14 = vld [vmem:[#allocation9 + $0x7a8] sm:$0xff] }
 0x15c   :  { %1151 = vmatpush.msra.mxu2 %v840_v16  ;;  %1171 = vmatpush.msra.mxu3 %v856_v17  ;;  %v871_v15 = vld [vmem:[#allocation9 + $0x608] sm:$0xff]  ;;  %v600_v17 = vadd.f32 %v599_v9, %v252_v5 }
 0x15d   :  { %1179 = vmatpush.msrb.mxu0 %v884_v18  ;;  %1199 = vmatpush.msrb.mxu1 %v900_v19  ;;  %v887_v16 = vld [vmem:[#allocation9 + $0x688] sm:$0xff]  ;;  %v620_v18 = vadd.f32 %v619_v10, %v253_v6  ;;  %v906_v19 = vld [vmem:[#allocation9 + $0x720] sm:$0xff] }
 0x15e   :  { %1152 = vmatpush.msra.mxu2 %v839_v22  ;;  %1172 = vmatpush.msra.mxu3 %v855_v23  ;;  %v886_v22 = vld [vmem:[#allocation9 + $0x680] sm:$0xff]  ;;  %v254_v23 = vperm.slane %v1557_v45, 6 }
 0x15f   :  { %1180 = vmatpush.msrb.mxu0 %v883_v24  ;;  %1200 = vmatpush.msrb.mxu1 %v899_v25  ;;  %v255_v24 = vperm.slane %v1557_v45, 7  ;;  %v905_v25 = vld [vmem:[#allocation9 + $0x718] sm:$0xff]  ;;  %v903_v45 = vld [vmem:[#allocation9 + $0x708] sm:$0xff] }
 0x160   :  { %1153 = vmatpush.msra.mxu2 %v838_v26  ;;  %1173 = vmatpush.msra.mxu3 %v854_v27  ;;  %v921_v26 = vld [vmem:[#allocation9 + $0x798] sm:$0xff]  ;;  %v639_v27 = vpop.f32.mrf.mxu2 }
 0x161   :  { %1154 = vmatmul.f32.vlgmr.msra.gmra.mxu2 %v672_v28  ;;  %1174 = vmatmul.f32.vlgmr.msra.gmra.mxu3 %v673_v29  ;;  %v659_v28 = vpop.f32.mrf.mxu3  ;;  %v674_v29 = vmax.f32 %v600_v17, 0.0 }
 0x162   :  { %1181 = vmatpush.msrb.mxu0 %v882_v30  ;;  %1201 = vmatpush.msrb.mxu1 %v898_v31  ;;  %v675_v30 = vmax.f32 %v620_v18, 0.0  ;;  %v904_v31 = vld [vmem:[#allocation9 + $0x710] sm:$0xff] }
 0x163   :  { %1218 = vmatpush.msrb.mxu2 %v917_v32  ;;  %1238 = vmatpush.msrb.mxu3 %v933_v33  ;;  %v920_v32 = vld [vmem:[#allocation9 + $0x790] sm:$0xff]  ;;  %v640_v33 = vadd.f32 %v639_v27, %v254_v23 }
 0x164   :  { %1182 = vmatpush.msrb.mxu0 %v881_v34  ;;  %1202 = vmatpush.msrb.mxu1 %v897_v35  ;;  %v660_v34 = vadd.f32 %v659_v28, %v255_v24  ;;  %v919_v35 = vld [vmem:[#allocation9 + $0x788] sm:$0xff] }
 0x165   :  { %1219 = vmatpush.msrb.mxu2 %v916_v36  ;;  %1239 = vmatpush.msrb.mxu3 %v932_v37  ;;  %v902_v36 = vld [vmem:[#allocation9 + $0x700] sm:$0xff] }
 0x166   :  { %1183 = vmatpush.msrb.mxu0 %v880_v38  ;;  %1203 = vmatpush.msrb.mxu1 %v896_v39  ;;  %v918_v37 = vld [vmem:[#allocation9 + $0x780] sm:$0xff]  ;;  %v676_v38 = vmax.f32 %v640_v33, 0.0  ;;  %v677_v39 = vmax.f32 %v660_v34, 0.0 }
 0x167   :  { %1220 = vmatpush.msrb.mxu2 %v915_v40  ;;  %1240 = vmatpush.msrb.mxu3 %v931_v41  ;;  %v1318_v40 = vld [vmem:[%s1577_s4] ss:$0 sm:$0xff]  ;;  %s1454_s4 = smov [#allocation11]  }
 0x168   :  { %1184 = vmatpush.msrb.mxu0 %v879_v42  ;;  %1204 = vmatpush.msrb.mxu1 %v895_v43  ;;  %s1264_s13 = sshll.u32 %s1454_s4, 4  ;;  %s1265_s13 = int_to_ptr.vmem [resolvable:$true] %s1264_s13 }
 0x169   :  { %1221 = vmatpush.msrb.mxu2 %v914_v44  ;;  %1241 = vmatpush.msrb.mxu3 %v930_v46 }
 0x16a   :  { %1185 = vmatpush.msrb.mxu0 %v878_v47  ;;  %1205 = vmatpush.msrb.mxu1 %v894_v48 }
 0x16b   :  { %1222 = vmatpush.msrb.mxu2 %v913_v49  ;;  %1242 = vmatpush.msrb.mxu3 %v929_v50 }
 0x16c   :  { %1186 = vmatpush.msrb.mxu0 %v877_v51  ;;  %1206 = vmatpush.msrb.mxu1 %v893_v52 }
 0x16d   :  { %1223 = vmatpush.msrb.mxu2 %v912_v53  ;;  %1243 = vmatpush.msrb.mxu3 %v928_v54 }
 0x16e   :  { %1187 = vmatpush.msrb.mxu0 %v876_v55  ;;  %1207 = vmatpush.msrb.mxu1 %v892_v56 }
 0x16f   :  { %1224 = vmatpush.msrb.mxu2 %v911_v57  ;;  %1244 = vmatpush.msrb.mxu3 %v927_v58 }
 0x170   :  { %1188 = vmatpush.msrb.mxu0 %v875_v59  ;;  %1208 = vmatpush.msrb.mxu1 %v891_v60 }
 0x171   :  { %1225 = vmatpush.msrb.mxu2 %v910_v61  ;;  %1245 = vmatpush.msrb.mxu3 %v926_v62 }
 0x172   :  { %1189 = vmatpush.msrb.mxu0 %v874_v63  ;;  %1209 = vmatpush.msrb.mxu1 %v890_v0 }
 0x173   :  { %1226 = vmatpush.msrb.mxu2 %v909_v1  ;;  %1246 = vmatpush.msrb.mxu3 %v925_v2 }
 0x174   :  { %1190 = vmatpush.msrb.mxu0 %v873_v3  ;;  %1210 = vmatpush.msrb.mxu1 %v889_v4 }
 0x175   :  { %1227 = vmatpush.msrb.mxu2 %v908_v7  ;;  %1247 = vmatpush.msrb.mxu3 %v924_v8 }
 0x176   :  { %1191 = vmatpush.msrb.mxu0 %v872_v11  ;;  %1211 = vmatpush.msrb.mxu1 %v888_v12 }
 0x177   :  { %1228 = vmatpush.msrb.mxu2 %v907_v13  ;;  %1248 = vmatpush.msrb.mxu3 %v923_v14 }
 0x178   :  { %1192 = vmatpush.msrb.mxu0 %v871_v15  ;;  %1212 = vmatpush.msrb.mxu1 %v887_v16 }
 0x179   :  { %1229 = vmatpush.msrb.mxu2 %v906_v19  ;;  %1249 = vmatpush.msrb.mxu3 %v922_v20 }
 0x17a   :  { %1193 = vmatpush.msrb.mxu0 %v870_v21  ;;  %1213 = vmatpush.msrb.mxu1 %v886_v22 }
 0x17b   :  { %1230 = vmatpush.msrb.mxu2 %v905_v25  ;;  %1250 = vmatpush.msrb.mxu3 %v921_v26 }
 0x17c   :  { %1194 = vmatmul.f32.vlgmr.msrb.gmra.mxu0 %v674_v29  ;;  %1214 = vmatmul.f32.vlgmr.msrb.gmra.mxu1 %v675_v30 }
 0x17d   :  { %1231 = vmatpush.msrb.mxu2 %v904_v31  ;;  %1251 = vmatpush.msrb.mxu3 %v920_v32 }
 0x17f   :  { %1232 = vmatpush.msrb.mxu2 %v903_v45  ;;  %1252 = vmatpush.msrb.mxu3 %v919_v35 }
 0x181   :  { %1233 = vmatpush.msrb.mxu2 %v902_v36  ;;  %1253 = vmatpush.msrb.mxu3 %v918_v37 }
 0x182   :  { %1234 = vmatmul.f32.vlgmr.msrb.gmra.mxu2 %v676_v38  ;;  %1254 = vmatmul.f32.vlgmr.msrb.gmra.mxu3 %v677_v39 }
 0x1b3   :  { %v955_v41 = vpop.f32.mrf.mxu0  ;;  %v975_v43 = vpop.f32.mrf.mxu1 }
 0x1b4   :  { %v956_v42 = vadd.f32 %v1318_v40, %v955_v41 }
 0x1b6   :  { %v976_v46 = vadd.f32 %v975_v43, %v956_v42 }
 0x1bd   :  { %v1035_v50 = vpop.f32.mrf.mxu0  ;;  %v1055_v52 = vpop.f32.mrf.mxu1 }
 0x1c0   :  { %v995_v44 = vpop.f32.mrf.mxu2  ;;  %v1015_v48 = vpop.f32.mrf.mxu3 }
 0x1c1   :  { %v996_v47 = vadd.f32 %v995_v44, %v976_v46 }
 0x1c3   :  { %v1016_v49 = vadd.f32 %v1015_v48, %v996_v47 }
 0x1c5   :  { %v1036_v51 = vadd.f32 %v1035_v50, %v1016_v49 }
 0x1c7   :  { %v1056_v53 = vadd.f32 %v1055_v52, %v1036_v51 }
 0x1ca   :  { %v1075_v54 = vpop.f32.mrf.mxu2  ;;  %v1095_v56 = vpop.f32.mrf.mxu3 }
 0x1cb   :  { %v1076_v55 = vadd.f32 %v1075_v54, %v1056_v53 }
 0x1cd   :  { %v1096_v58 = vadd.f32 %v1095_v56, %v1076_v55 }
 0x1d7   :  { %v1115_v57 = vpop.f32.mrf.mxu0  ;;  %v1135_v60 = vpop.f32.mrf.mxu1 }
 0x1d8   :  { %v1116_v59 = vadd.f32 %v1115_v57, %v1096_v58 }
 0x1da   :  { %v1136_v62 = vadd.f32 %v1135_v60, %v1116_v59 }
 0x1e4   :  { %v1155_v61 = vpop.f32.mrf.mxu2  ;;  %v1175_v0 = vpop.f32.mrf.mxu3 }
 0x1e5   :  { %v1156_v63 = vadd.f32 %v1155_v61, %v1136_v62 }
 0x1e7   :  { %v1176_v2 = vadd.f32 %v1175_v0, %v1156_v63 }
 0x1f9   :  { %v1195_v1 = vpop.f32.mrf.mxu0  ;;  %v1215_v4 = vpop.f32.mrf.mxu1 }
 0x1fa   :  { %v1196_v3 = vadd.f32 %v1195_v1, %v1176_v2 }
 0x1fc   :  { %v1216_v5 = vadd.f32 %v1215_v4, %v1196_v3 }
 0x205   :  { %v1235_v6 = vpop.f32.mrf.mxu2  ;;  %v1255_v8 = vpop.f32.mrf.mxu3 }
 0x206   :  { %v1236_v7 = vadd.f32 %v1235_v6, %v1216_v5 }
 0x208   :  { %v1256_v9 = vadd.f32 %v1255_v8, %v1236_v7 }
 0x20a   :  { %1258 = vst [vmem:[#allocation11] sm:$0xff] %v1256_v9 }
 0x20b   :  { %1269 = dma.vmem_to_hbm [thread:$0]  %s1265_s13, 128, %s1267_s16, [#allocation5]  }
 0x20c   :  { %1445 = dma.done.wait [#allocation5], 128  }
 0x20d   :  { %1446 = vsyncadd [#allocation5], 4294967168 }
 0x20e   :  { %1274 = vsyncpa [#allocation4], 1 }
 0x20f   :  { %1275 = vsyncpa [#allocation7], 1 }
 0x210   :  { %1276 = vsyncpa [#allocation10], 1 }
 0x211   :  { %1277 = vsyncpa [#allocation5], 1 }

</bundles_post_ra>
